<compile_context>
chip_gen: v5e
topology: v5e:2x2
jax: 0.10.0
libtpu: 0.0.40
codegen_flags: <defaults>
</compile_context>

<pallas_src>
from functools import partial
import math

import jax
import jax.numpy as jnp
from jax.experimental import pallas as pl
from jax.experimental.pallas import tpu as pltpu


# ----------------------------------------------------------------------------
# Kernel 1: fused node projections (V | e_src | e_dst), one bf16 MXU matmul,
#           tiled over nodes.
# ----------------------------------------------------------------------------
def proj_kernel(x_ref, w_ref, v_ref, edst_ref, esrcT_ref, *, num_heads, fout):
    # Single bf16 push with K = Fin and N = Fout + 2H, f32 accumulation.
    xw = jnp.dot(x_ref[...], w_ref[...],
                 preferred_element_type=jnp.float32)          # [T, Fout + 2H]
    v_ref[...] = xw[:, :fout].astype(v_ref.dtype)             # [T, Fout]
    e_src = xw[:, fout:fout + num_heads]                       # [T, H]
    edst_ref[...] = xw[:, fout + num_heads:fout + 2 * num_heads]   # [T, H]
    # One small transpose per node tile so the attention kernel never
    # transposes anything per (dst, src) tile.
    esrcT_ref[...] = jnp.transpose(e_src)                      # [H, T]


# ----------------------------------------------------------------------------
# Kernel 2: edge-softmax + aggregation, (dst_tile, src_tile) grid,
#           flash-style online softmax over the src axis.
# ----------------------------------------------------------------------------
def attn_kernel(edst_ref, esrcT_ref, v_ref, adjt_ref, out_ref,
                m_scr, l_scr, acc_scr, *, num_heads, d_head):
    j = pl.program_id(1)
    nj = pl.num_programs(1)
    neg = jnp.float32(-1e30)

    @pl.when(j == 0)
    def _init():
        m_scr[...] = jnp.full_like(m_scr, neg)
        l_scr[...] = jnp.zeros_like(l_scr)
        acc_scr[...] = jnp.zeros_like(acc_scr)

    # Additive mask bias shared by all heads (0 on edges, -1e30 elsewhere):
    # one cast + fma per element per tile instead of compare+select per head.
    bias = (adjt_ref[...].astype(jnp.float32) - 1.0) * jnp.float32(1e30)

    e_dst = edst_ref[...]                          # [T_dst, H]    f32
    e_srcT = esrcT_ref[...]                        # [H, T_src]    f32
    v = v_ref[...]                                 # [T_src, Fout] bf16
    m_prev = m_scr[...]                            # [T_dst, H]
    l_prev = l_scr[...]                            # [T_dst, H]
    t_dst = e_dst.shape[0]

    m_cols, l_cols, alpha_cols, pv_cols = [], [], [], []
    for h in range(num_heads):                     # H is small & static
        # s[d, s'] = e_dst[d, h] + e_src[s', h]
        s = e_dst[:, h:h + 1] + e_srcT[h:h + 1, :]          # [T_dst, T_src]
        s = jnp.maximum(s, 0.2 * s) + bias                  # LeakyReLU(0.2)+mask

        m_h = m_prev[:, h:h + 1]
        m_new = jnp.maximum(m_h, jnp.max(s, axis=-1, keepdims=True))
        alpha = jnp.exp(m_h - m_new)
        # No second mask-select on p: masked entries are exp(-1e30 - m) == 0
        # once a real edge has been seen for the row (the self-loop from
        # add_self_loop guarantees one), and anything accumulated before that
        # is wiped by alpha = exp(-1e30 - m_real) = 0.
        p = jnp.exp(s - m_new)                              # [T_dst, T_src]

        l_cols.append(alpha * l_prev[:, h:h + 1]
                      + jnp.sum(p, axis=-1, keepdims=True))
        pv_cols.append(jnp.dot(p.astype(jnp.bfloat16),
                               v[:, h * d_head:(h + 1) * d_head],
                               preferred_element_type=jnp.float32))
        alpha_cols.append(jnp.broadcast_to(alpha, (t_dst, d_head)))
        m_cols.append(m_new)

    # Full-width scratch updates: one unmasked store per buffer instead of
    # per-head half-vreg read-modify-write column slices.
    m_scr[...] = jnp.concatenate(m_cols, axis=1)             # [T_dst, H]
    l_scr[...] = jnp.concatenate(l_cols, axis=1)             # [T_dst, H]
    alpha_full = jnp.concatenate(alpha_cols, axis=1)          # [T_dst, Fout]
    pv_full = jnp.concatenate(pv_cols, axis=1)                # [T_dst, Fout]
    acc_scr[...] = alpha_full * acc_scr[...] + pv_full

    @pl.when(j == nj - 1)
    def _finalize():
        # Clamp l so padded / edgeless rows never produce inf/NaN.
        inv_l = pl.reciprocal(jnp.maximum(l_scr[...], jnp.float32(1e-30)),
                              approx=True)                    # [T_dst, H] (EUP)
        inv_full = jnp.concatenate(
            [jnp.broadcast_to(inv_l[:, h:h + 1], (t_dst, d_head))
             for h in range(num_heads)], axis=1)              # [T_dst, Fout]
        # One lane-dense, full-width store of the output tile.
        out_ref[...] = (acc_scr[...] * inv_full).astype(out_ref.dtype)


# ----------------------------------------------------------------------------
# Host-side helpers
# ----------------------------------------------------------------------------
def _pad_multiple(n, tile_dst, tile_src):
    m = math.lcm(tile_dst, tile_src)
    return ((n + m - 1) // m) * m


def preprocess_adjacency(adj_t, n_pad):
    """One-time graph preprocessing (hoisted out of the per-layer forward so it
    can be cached across layers / steps): dense [dst, src] adjacency ->
    zero-padded int8 mask (4x less HBM/VMEM traffic than f32)."""
    n = adj_t.shape[0]
    adj_i8 = (adj_t != 0).astype(jnp.int8)
    pad = n_pad - n
    if pad:
        adj_i8 = jnp.pad(adj_i8, ((0, pad), (0, pad)))
    return adj_i8


# ----------------------------------------------------------------------------
# Wrapper
# ----------------------------------------------------------------------------
def gat_forward(x, w_attn_t, w_lin_t, a, adj_i8, *, num_heads,
                tile_dst=256, tile_src=512, out_dtype=None):
    """x: [N, Fin]; w_attn_t / w_lin_t: [Fin, Fout] (pre-transposed weights);
    a: [H, 2*dh]; adj_i8: [N_pad, N_pad] int8, row j = sources feeding node j,
    already padded (see preprocess_adjacency).

    tile_dst / tile_src: attention tile sizes.  Keep n_pad / tile_dst >= 2 (and
    ideally even) so the 'parallel' dst axis feeds both v7x TensorCores."""
    n, fin = x.shape
    fout = w_lin_t.shape[1]
    dh = fout // num_heads
    h2 = 2 * num_heads
    out_dtype = x.dtype if out_dtype is None else out_dtype

    n_pad = adj_i8.shape[0]
    assert adj_i8.shape == (n_pad, n_pad)
    assert n_pad >= n and n_pad % tile_dst == 0 and n_pad % tile_src == 0

    # --- parameter prep (cacheable; O(Fin*Fout), independent of N) ---
    # Fold the attention vector `a` into the attention weight:
    #   wa_src[:, h] = W_a[:, h*dh:(h+1)*dh] @ a[h, :dh]
    #   wa_dst[:, h] = W_a[:, h*dh:(h+1)*dh] @ a[h, dh:]
    wah = w_attn_t.astype(jnp.float32).reshape(fin, num_heads, dh)
    wa_src = jnp.einsum('fhd,hd->fh', wah, a[:, :dh].astype(jnp.float32))
    wa_dst = jnp.einsum('fhd,hd->fh', wah, a[:, dh:].astype(jnp.float32))
    # Single fused projection weight [Fin, Fout + 2H]:  V | e_src | e_dst.
    w_fused = jnp.concatenate(
        [w_lin_t.astype(jnp.float32), wa_src, wa_dst], axis=1
    ).astype(jnp.bfloat16)

    # Pad node features (cheap, O(N*Fin)); padded rows have no edges.
    pad = n_pad - n
    x_bf16 = x.astype(jnp.bfloat16)
    if pad:
        x_bf16 = jnp.pad(x_bf16, ((0, pad), (0, 0)))

    tile_proj = tile_src                       # divides n_pad by construction
    n_proj_tiles = n_pad // tile_proj
    n_dst_tiles = n_pad // tile_dst
    n_src_tiles = n_pad // tile_src

    # ---------------- projection pass ----------------
    proj_cost = pl.CostEstimate(
        flops=2 * n_pad * fin * (fout + h2),
        transcendentals=0,
        bytes_accessed=(2 * n_pad * fin + 2 * fin * (fout + h2)
                        + 2 * n_pad * fout + 8 * n_pad * num_heads),
    )
    v_all, e_dst_all, e_srcT_all = pl.pallas_call(
        partial(proj_kernel, num_heads=num_heads, fout=fout),
        out_shape=(
            jax.ShapeDtypeStruct((n_pad, fout), jnp.bfloat16),
            jax.ShapeDtypeStruct((n_pad, num_heads), jnp.float32),
            jax.ShapeDtypeStruct((num_heads, n_pad), jnp.float32),
        ),
        grid_spec=pltpu.PrefetchScalarGridSpec(
            num_scalar_prefetch=0,
            grid=(n_proj_tiles,),
            in_specs=[
                pl.BlockSpec((tile_proj, fin), lambda i: (i, 0)),
                pl.BlockSpec((fin, fout + h2), lambda i: (0, 0)),
            ],
            out_specs=[
                pl.BlockSpec((tile_proj, fout), lambda i: (i, 0)),
                pl.BlockSpec((tile_proj, num_heads), lambda i: (i, 0)),
                pl.BlockSpec((num_heads, tile_proj), lambda i: (0, i)),
            ],
        ),
        compiler_params=pltpu.CompilerParams(
            dimension_semantics=("parallel",)),
        cost_estimate=proj_cost,
    )(x_bf16, w_fused)

    # ---------------- attention / aggregation pass ----------------
    attn_cost = pl.CostEstimate(
        flops=2 * n_pad * n_pad * fout + 8 * num_heads * n_pad * n_pad,
        transcendentals=num_heads * n_pad * n_pad,
        bytes_accessed=(n_pad * n_pad                       # int8 adjacency
                        + n_dst_tiles * 2 * n_pad * fout    # V re-read per dst tile
                        + 4 * n_pad * fout                  # output
                        + n_dst_tiles * 4 * n_pad * h2),    # e tiles
    )
    out_pad = pl.pallas_call(
        partial(attn_kernel, num_heads=num_heads, d_head=dh),
        out_shape=jax.ShapeDtypeStruct((n_pad, fout), out_dtype),
        grid_spec=pltpu.PrefetchScalarGridSpec(
            num_scalar_prefetch=0,
            grid=(n_dst_tiles, n_src_tiles),                # (dst tiles, src tiles)
            in_specs=[
                pl.BlockSpec((tile_dst, num_heads), lambda i, j: (i, 0)),   # e_dst
                pl.BlockSpec((num_heads, tile_src), lambda i, j: (0, j)),   # e_src^T
                pl.BlockSpec((tile_src, fout), lambda i, j: (j, 0)),        # V (src)
                pl.BlockSpec((tile_dst, tile_src), lambda i, j: (i, j)),    # adj_t
            ],
            out_specs=pl.BlockSpec((tile_dst, fout), lambda i, j: (i, 0)),
            scratch_shapes=[
                pltpu.VMEM((tile_dst, num_heads), jnp.float32),   # m
                pltpu.VMEM((tile_dst, num_heads), jnp.float32),   # l
                pltpu.VMEM((tile_dst, fout), jnp.float32),        # acc
            ],
        ),
        compiler_params=pltpu.CompilerParams(
            dimension_semantics=("parallel", "arbitrary")),
        cost_estimate=attn_cost,
    )(e_dst_all, e_srcT_all, v_all, adj_i8)

    return out_pad[:n]


# ----------------------------------------------------------------------------
# Pure-JAX reference mirroring the PyTorch/DGL semantics (f32 end to end).
# ----------------------------------------------------------------------------
def gat_reference(x, w_attn_t, w_lin_t, a, adj, *, num_heads):
    n = x.shape[0]
    fout = w_lin_t.shape[1]
    dh = fout // num_heads
    K = (x @ w_attn_t).reshape(n, num_heads, dh)
    V = (x @ w_lin_t).reshape(n, num_heads, dh)
    e_src = jnp.einsum('nhd,hd->nh', K, a[:, :dh])
    e_dst = jnp.einsum('nhd,hd->nh', K, a[:, dh:])
    s = e_src[:, None, :] + e_dst[None, :, :]          # [src, dst, head]
    s = jnp.where(s > 0, s, 0.2 * s)
    mask = (adj > 0)[:, :, None]
    s = jnp.where(mask, s, -1e30)
    s = s - jnp.max(s, axis=0, keepdims=True)
    p = jnp.where(mask, jnp.exp(s), 0.0)
    attn = p / jnp.sum(p, axis=0, keepdims=True)
    return jnp.einsum('ijh,ihd->jhd', attn, V).reshape(n, fout)


if __name__ == "__main__":
    key = jax.random.PRNGKey(0)
    k_x, k_adj, k_wl, k_wa, k_a = jax.random.split(key, 5)

    N = 384            # number of graph nodes
    IN_FEATS = 64
    OUT_FEATS = 128    # lane-dense output (multiple of 128), dh = 64
    NUM_HEADS = 2
    D_HEAD = OUT_FEATS // NUM_HEADS
    TILE_DST = 128     # >= 2 dst tiles -> both v7x TensorCores get work
    TILE_SRC = 256     # larger src tile: fewer grid steps, better V reuse

    # Node features.
    x = jax.random.normal(k_x, (N, IN_FEATS), dtype=jnp.float32)

    # Synthetic directed graph -> remove self loops -> add self loops.
    adj = (jax.random.uniform(k_adj, (N, N)) < 0.15).astype(jnp.float32)  # adj[src, dst]
    adj = adj * (1.0 - jnp.eye(N, dtype=jnp.float32))                     # remove self loops
    adj = jnp.maximum(adj, jnp.eye(N, dtype=jnp.float32))                 # add self loops

    # One-time graph preprocessing (hoisted out of the layer forward; in
    # practice cached across layers / training steps).
    n_pad = _pad_multiple(N, TILE_DST, TILE_SRC)
    adj_i8 = preprocess_adjacency(adj.T, n_pad)    # adj_t[dst, src], int8, padded

    # Deterministic parameters (shapes from GATLayer.__init__).
    # nn.Linear(in_feats, out_feats, bias=False): weight [out, in]; kernel takes W.T.
    lim_lin = 1.0 / jnp.sqrt(jnp.float32(IN_FEATS))
    w_lin = jax.random.uniform(k_wl, (OUT_FEATS, IN_FEATS), minval=-lim_lin,
                               maxval=lim_lin, dtype=jnp.float32)
    w_attn = jax.random.uniform(k_wa, (OUT_FEATS, IN_FEATS), minval=-lim_lin,
                                maxval=lim_lin, dtype=jnp.float32)
    # a: [num_heads, 2 * out_feats // num_heads], xavier_uniform with gain 1.414.
    fan_in, fan_out = 2 * D_HEAD, NUM_HEADS
    bound = 1.414 * jnp.sqrt(6.0 / (fan_in + fan_out))
    a = jax.random.uniform(k_a, (NUM_HEADS, 2 * D_HEAD), minval=-bound,
                           maxval=bound, dtype=jnp.float32)

    out = gat_forward(x, w_attn.T, w_lin.T, a, adj_i8, num_heads=NUM_HEADS,
                      tile_dst=TILE_DST, tile_src=TILE_SRC)
    out = jax.block_until_ready(out)

    ref = gat_reference(x, w_attn.T, w_lin.T, a, adj, num_heads=NUM_HEADS)
    assert out.shape == (N, OUT_FEATS)
    max_err = float(jnp.max(jnp.abs(out - ref)))
    # bf16 MXU operands (incl. the attention logits) + approx reciprocal.
    assert jnp.allclose(out, ref, atol=5e-2, rtol=5e-2), \
        f"Pallas GAT output mismatch vs reference (max abs err {max_err})"

    print("KERNEL_OK")
</pallas_src>

<mosaic_0001>
module attributes {stable_mosaic.version = 11 : i64} {
  func.func @proj_kernel(%arg0: i32, %arg1: memref<256x64xbf16, #tpu.memory_space<vmem>>, %arg2: memref<64x132xbf16, #tpu.memory_space<vmem>>, %arg3: memref<256x128xbf16, #tpu.memory_space<vmem>>, %arg4: memref<256x2xf32, #tpu.memory_space<vmem>>, %arg5: memref<2x256xf32, #tpu.memory_space<vmem>>) attributes {dimension_semantics = [#tpu.dimension_semantics<parallel>], iteration_bounds = array<i64: 2>, scalar_prefetch = 0 : i64, scratch_operands = 0 : i64, tpu.core_type = #tpu.core_type<tc>, window_params = [{transform_indices = @transform_0, window_bounds = array<i64: 256, 64>}, {pipeline_mode = #tpu.pipeline_mode<synchronous>, transform_indices = @transform_1, window_bounds = array<i64: 64, 132>}, {transform_indices = @transform_2, window_bounds = array<i64: 256, 128>}, {transform_indices = @transform_3, window_bounds = array<i64: 256, 2>}, {transform_indices = @transform_4, window_bounds = array<i64: 2, 256>}]} {
    %c0 = arith.constant 0 : index
    %c0_0 = arith.constant 0 : index
    %0 = vector.load %arg1[%c0, %c0_0] : memref<256x64xbf16, #tpu.memory_space<vmem>>, vector<256x64xbf16>
    %c0_1 = arith.constant 0 : index
    %c0_2 = arith.constant 0 : index
    %1 = vector.load %arg2[%c0_1, %c0_2] : memref<64x132xbf16, #tpu.memory_space<vmem>>, vector<64x132xbf16>
    %cst = arith.constant dense<0.000000e+00> : vector<256x132xf32>
    %2 = tpu.matmul %0, %1, %cst {dimension_numbers = #tpu.dot_dimension_numbers<[1], [0], [0], [1], [0, 0, 1, 1], [], []>} : vector<256x64xbf16>, vector<64x132xbf16>, vector<256x132xf32> -> vector<256x132xf32>
    %3 = vector.extract_strided_slice %2 {offsets = [0, 0], sizes = [256, 128], strides = [1, 1]} : vector<256x132xf32> to vector<256x128xf32>
    %4 = arith.truncf %3 : vector<256x128xf32> to vector<256x128xbf16>
    %c0_3 = arith.constant 0 : index
    %c0_4 = arith.constant 0 : index
    %5 = vector.load %arg3[%c0_3, %c0_4] : memref<256x128xbf16, #tpu.memory_space<vmem>>, vector<256x128xbf16>
    tpu.vector_store %arg3[%c0_3, %c0_4], %4 {strides = array<i32>} : memref<256x128xbf16, #tpu.memory_space<vmem>>, vector<256x128xbf16>,
    %6 = vector.extract_strided_slice %2 {offsets = [0, 128], sizes = [256, 2], strides = [1, 1]} : vector<256x132xf32> to vector<256x2xf32>
    %7 = vector.extract_strided_slice %2 {offsets = [0, 130], sizes = [256, 2], strides = [1, 1]} : vector<256x132xf32> to vector<256x2xf32>
    %c0_5 = arith.constant 0 : index
    %c0_6 = arith.constant 0 : index
    %8 = vector.load %arg4[%c0_5, %c0_6] : memref<256x2xf32, #tpu.memory_space<vmem>>, vector<256x2xf32>
    tpu.vector_store %arg4[%c0_5, %c0_6], %7 {strides = array<i32>} : memref<256x2xf32, #tpu.memory_space<vmem>>, vector<256x2xf32>,
    %9 = tpu.transpose %6, [1, 0] : vector<256x2xf32> -> vector<2x256xf32>
    %c0_7 = arith.constant 0 : index
    %c0_8 = arith.constant 0 : index
    %10 = vector.load %arg5[%c0_7, %c0_8] : memref<2x256xf32, #tpu.memory_space<vmem>>, vector<2x256xf32>
    tpu.vector_store %arg5[%c0_7, %c0_8], %9 {strides = array<i32>} : memref<2x256xf32, #tpu.memory_space<vmem>>, vector<2x256xf32>,
    return
  }
  func.func @transform_0(%arg0: i32) -> (i32, i32) {
    %c0_i32 = arith.constant 0 : i32
    %c0_i32_0 = arith.constant 0 : i32
    return %arg0, %c0_i32 : i32, i32
  }
  func.func @transform_1(%arg0: i32) -> (i32, i32) {
    %c0_i32 = arith.constant 0 : i32
    %c0_i32_0 = arith.constant 0 : i32
    %c0_i32_1 = arith.constant 0 : i32
    return %c0_i32, %c0_i32_0 : i32, i32
  }
  func.func @transform_2(%arg0: i32) -> (i32, i32) {
    %c0_i32 = arith.constant 0 : i32
    %c0_i32_0 = arith.constant 0 : i32
    return %arg0, %c0_i32 : i32, i32
  }
  func.func @transform_3(%arg0: i32) -> (i32, i32) {
    %c0_i32 = arith.constant 0 : i32
    %c0_i32_0 = arith.constant 0 : i32
    return %arg0, %c0_i32 : i32, i32
  }
  func.func @transform_4(%arg0: i32) -> (i32, i32) {
    %c0_i32 = arith.constant 0 : i32
    %c0_i32_0 = arith.constant 0 : i32
    return %c0_i32, %arg0 : i32, i32
  }
}

</mosaic_0001>

<bundles_post_ra>
// kernel: tpu_custom_call.1
= control target key start
LH: loop header
LB: loop body
LE: loop exit
PB: predicated region body
PF: predicated region fallthrough
CT: control target
= control target key end

     0   :  { %10 = vsyncpa [#allocation3], 0  ;;  %s2037_s0 = inlined_call_operand.vmem [shape: bf16[512,64], index: 0, kind: input, shape index: {}]   ;;  %s2038_s1 = inlined_call_operand.vmem [shape: bf16[64,132], index: 1, kind: input, shape index: {}]   ;;  %s2039_s2 = inlined_call_operand.hbm [shape: bf16[512,128], index: 2, kind: output, shape index: {0}]   ;;  %s2040_s3 = inlined_call_operand.vmem [shape: f32[512,2], index: 3, kind: output, shape index: {1}]   ;;  %s2041_s4 = inlined_call_operand.hbm [shape: f32[2,512], index: 4, kind: output, shape index: {2}]  }
   0x1   :  { %12 = vsyncpa [#allocation3 + $0x1], 0 }
   0x2   :  { %13 = vsyncpa [#allocation5], 0 }
   0x3   :  { %15 = vsyncpa [#allocation5 + $0x1], 0  ;;  %s1519_s15 = smov 0   ;;  %s1521_s16 = smov 0  }
   0x4   :  { %s1523_s17 = smov 0   ;;  %s1525_s18 = smov 0  }
   0x5 LB: > { %s1540_s19 = sadd.s32 4294967295, %s1489_s18   ;;  %s1073_s20 = sadd.s32 4294967294, %s1489_s18   ;;  %s1489_s18 = sphi %s1525_s18, %s2047_s18   ;;  %s1485_s17 = sphi %s1523_s17, %s2046_s17   ;;  %s1481_s16 = sphi %s1521_s16, %s2045_s16   ;;  %s1477_s15 = sphi %s1519_s15, %s2044_s15  }
   0x6   : > { %s1544_s21 = sadd.s32 1, %s1489_s18   ;;  %s75_s22 = sadd.s32 1, %s1485_s17 }
   0x7   : > { %s72_s23 = ssub.s32 %s1489_s18, %s1544_s21  ;;  %p85_p0 = scmp.ne.s32.totalorder %s1485_s17, %s1481_s16 }
   0x8   : > { %p73_p1 = scmp.eq.s32.totalorder %s72_s23, 0  ;;  %p86_p2 = scmp.eq.s32.totalorder %s1540_s19, 1 }
   0x9   : > { %p91_p3 = scmp.ne.s32.totalorder %s1481_s16, %s1477_s15  ;;  %p92_p4 = scmp.eq.s32.totalorder %s1073_s20, 1 }
   0xa   : > { %s1555_s24 = scalar_select %p73_p1, %s1485_s17, %s75_s22  }
   0xb   : > { %p1557_p5 = por %p86_p2, %p85_p0  ;;  %p1561_p6 = por %p92_p4, %p91_p3 }
   0xc   : > { %p1076_p7 = scmp.ge.s32.totalorder %s1489_s18, 1  ;;  %p174_p8 = scmp.lt.s32.totalorder %s1489_s18, 3 }
   0xe   : > { %p175_p9 = pnand %p1076_p7, %p174_p8 }
   0xf   : > { %s1079_s9 = sshll.u32 (!%p175_p9), %s1540_s19, 5  ;;  %s1491_s5 = smov (!%p175_p9), 126  }
  0x10   : > { %178 = sbr.rel (%p175_p9) target bundleno = 496 (0x1f0), region = 28  ;;  %p211_p10 = scmp.lt.s32.totalorder (!%p175_p9), %s1079_s9, 63 }
  0x11   : > { %s1243_s13 = sshll.u32 (!%p175_p9), %s1540_s19, 7  ;;  %s1415_s8 = scalar_lea.hbm (!%p175_p9), %s2039_s2, 256 }
  0x12   : > { %s930_s22 = scalar_lea.hbm (!%p175_p9), %s2039_s2, %s1243_s13 }
  0x15   : > { %v1241_v0 = vld [vmem:[%s2038_s1 + $0x34] sm:$0xf]  ;;  %v1175_v1 = vld [vmem:[%s2038_s1 + $0x38] sm:$0xf0]  ;;  %v1239_v2 = vld [vmem:[%s2038_s1 + $0x24] sm:$0xf] }
  0x16   : > { %v1178_v3 = vor.u32 %v1241_v0, %v1175_v1  ;;  %v1167_v4 = vld [vmem:[%s2038_s1 + $0x28] sm:$0xf0]  ;;  %v1237_v6 = vld [vmem:[%s2038_s1 + $0x14] sm:$0xf]  ;;  %v1159_v7 = vld [vmem:[%s2038_s1 + $0x18] sm:$0xf0] }
  0x17   : > { %v1170_v5 = vor.u32 %v1239_v2, %v1167_v4  ;;  %s2049_s9 = smov (!%p211_p10, %s1079_s9), 63  ;;  %v1162_v8 = vor.u32 %v1237_v6, %v1159_v7  ;;  %v1235_v9 = vld [vmem:[%s2038_s1 + $0x4] sm:$0xf]  ;;  %v1151_v10 = vld [vmem:[%s2038_s1 + $0x8] sm:$0xf0]  ;;  %vm385_vm0 = vcmask 523264  }
  0x18   : > { %527 = vmatpush.bf16.msra.mxu1 %v1178_v3  ;;  %1344 = vmatpush.bf16.msra.mxu3 %v1178_v3  ;;  %s1080_s27 = sshll.u32 %s2049_s9, 2  ;;  %v1154_v11 = vor.u32 %v1235_v9, %v1151_v10  ;;  %v1173_v33 = vld [vmem:[%s2038_s1 + $0x30] sm:$0xf]  ;;  %v1242_v34 = vld [vmem:[%s2038_s1 + $0x34] sm:$0xf0]  ;;  %s1082_s7 = sshll.u32 %s2049_s9, 3 }
  0x19   : > { %s1598_s30 = scalar_lea.vmem %s2037_s0, %s1080_s27  ;;  %v1174_v35 = vor.u32 %v1242_v34, %v1173_v33  ;;  %v1165_v36 = vld [vmem:[%s2038_s1 + $0x20] sm:$0xf]  ;;  %v1240_v37 = vld [vmem:[%s2038_s1 + $0x24] sm:$0xf0]  ;;  %v1157_v41 = vld [vmem:[%s2038_s1 + $0x10] sm:$0xf]  ;;  %s1832_s11 = scalar_lea.vmem %s2040_s3, %s1082_s7 }
  0x1a   : > { %v1601_v12 = vld [vmem:[%s1598_s30] sm:$0xff]  ;;  %v1611_v14 = vld [vmem:[%s1598_s30 + $0x8] sm:$0xff]  ;;  %v1621_v16 = vld [vmem:[%s1598_s30 + $0x10] sm:$0xff]  ;;  %v1166_v39 = vor.u32 %v1240_v37, %v1165_v36  ;;  %vm804_vm1 = vcmask 15360   ;;  %s1902_s9 = sand.u32 1, %s1481_s16   ;;  %s933_s27 = sshll.u32 %s930_s22, 4  ;;  %s934_s27 = int_to_ptr.hbm [resolvable:$true] %s933_s27 }
  0x1b   : > { %v1604_v13 = vld [vmem:[%s1598_s30 + $0x40] sm:$0xff]  ;;  %v1614_v15 = vld [vmem:[%s1598_s30 + $0x48] sm:$0xff]  ;;  %v1624_v17 = vld [vmem:[%s1598_s30 + $0x50] sm:$0xff]  ;;  %1340 = vmatpush.bf16.msra.mxu2 %v1174_v35  ;;  %438 = vmatpush.bf16.msra.mxu0 %v1174_v35  ;;  %s909_s28 = scalar_lea.sflag [#allocation3], %s1902_s9  ;;  %s1409_s29 = sshra.s32 %s934_s27, 4  ;;  %s1410_s29 = int_to_ptr.hbm [resolvable:$true] %s1409_s29 }
  0x1c   : > { %528 = vmatpush.bf16.msra.mxu1 %v1170_v5  ;;  %1345 = vmatpush.bf16.msra.mxu3 %v1170_v5  ;;  %v1631_v18 = vld [vmem:[%s1598_s30 + $0x18] sm:$0xff]  ;;  %v1641_v20 = vld [vmem:[%s1598_s30 + $0x20] sm:$0xff]  ;;  %v1651_v22 = vld [vmem:[%s1598_s30 + $0x28] sm:$0xff]  ;;  %p1416_p0 = scmp.lt.s32.totalorder %s1410_s29, %s2039_s2 }
  0x1d   : > { %v1634_v19 = vld [vmem:[%s1598_s30 + $0x58] sm:$0xff]  ;;  %v1644_v21 = vld [vmem:[%s1598_s30 + $0x60] sm:$0xff]  ;;  %v1654_v23 = vld [vmem:[%s1598_s30 + $0x68] sm:$0xff] }
  0x1e   : > { %v1661_v24 = vld [vmem:[%s1598_s30 + $0x30] sm:$0xff]  ;;  %v1671_v26 = vld [vmem:[%s1598_s30 + $0x38] sm:$0xff]  ;;  %v1149_v44 = vld [vmem:[%s2038_s1] sm:$0xf] }
  0x1f   : > { %v1664_v25 = vld [vmem:[%s1598_s30 + $0x70] sm:$0xff]  ;;  %v1674_v27 = vld [vmem:[%s1598_s30 + $0x78] sm:$0xff]  ;;  %1341 = vmatpush.bf16.msra.mxu2 %v1166_v39  ;;  %439 = vmatpush.bf16.msra.mxu0 %v1166_v39  ;;  %v1236_v45 = vld [vmem:[%s2038_s1 + $0x4] sm:$0xf0]  ;;  %s1411_s30 = scalar_lea.hbm %s1410_s29, 128 }
  0x20   : > { %529 = vmatpush.bf16.msra.mxu1 %v1162_v8  ;;  %1346 = vmatpush.bf16.msra.mxu3 %v1162_v8  ;;  %v1238_v42 = vld [vmem:[%s2038_s1 + $0x14] sm:$0xf0]  ;;  %v1150_v47 = vor.u32 %v1236_v45, %v1149_v44  ;;  %p1412_p11 = scmp.ne.s32.totalorder %s1410_s29, %s1411_s30  ;;  %p1417_p1 = scmp.lt.s32.totalorder %s1415_s8, %s1411_s30 }
  0x21   : > { %v1158_v43 = vor.u32 %v1238_v42, %v1157_v41 }
  0x22   : > { %p1413_p12 = pnand %p1412_p11, %p1557_p5  ;;  %p1418_p2 = por %p1417_p1, %p1416_p0 }
  0x23   : > { %1342 = vmatpush.bf16.msra.mxu2 %v1158_v43  ;;  %440 = vmatpush.bf16.msra.mxu0 %v1158_v43 }
  0x24   : > { %530 = vmatpush.bf16.msra.mxu1 %v1154_v11  ;;  %1347 = vmatpush.bf16.msra.mxu3 %v1154_v11  ;;  %p1414_p13 = pneg %p1413_p12 }
  0x26   : > { %p1419_p3 = pnand %p1418_p2, %p1414_p13 }
  0x27   : > { %1195 = vmatmul.msk.bf16.vlgmr.msra.gmra.mxu1 %vm385_vm0, %v1601_v12  ;;  %1203 = vmatmul.msk.bf16.vlgmr.msra.gmra.mxu3 %vm385_vm0, %v1604_v13 }
  0x28   : > { %1343 = vmatpush.bf16.msra.mxu2 %v1150_v47  ;;  %441 = vmatpush.bf16.msra.mxu0 %v1150_v47 }
  0x2b   : > { %1187 = vmatmul.msk.bf16.vlgmr.msra.gmra.mxu2 %vm385_vm0, %v1604_v13  ;;  %1179 = vmatmul.msk.bf16.vlgmr.msra.gmra.mxu0 %vm385_vm0, %v1601_v12 }
  0x37   : > { %1196 = vmatmul.msk.bf16.gmra.mxu1 %vm385_vm0, %v1611_v14  ;;  %1204 = vmatmul.msk.bf16.gmra.mxu3 %vm385_vm0, %v1614_v15 }
  0x3b   : > { %1188 = vmatmul.msk.bf16.gmra.mxu2 %vm385_vm0, %v1614_v15  ;;  %1180 = vmatmul.msk.bf16.gmra.mxu0 %vm385_vm0, %v1611_v14 }
  0x47   : > { %1197 = vmatmul.msk.bf16.gmra.mxu1 %vm385_vm0, %v1621_v16  ;;  %1205 = vmatmul.msk.bf16.gmra.mxu3 %vm385_vm0, %v1624_v17 }
  0x4b   : > { %1189 = vmatmul.msk.bf16.gmra.mxu2 %vm385_vm0, %v1624_v17  ;;  %1181 = vmatmul.msk.bf16.gmra.mxu0 %vm385_vm0, %v1621_v16 }
  0x57   : > { %1198 = vmatmul.msk.bf16.gmra.mxu1 %vm385_vm0, %v1631_v18  ;;  %1206 = vmatmul.msk.bf16.gmra.mxu3 %vm385_vm0, %v1634_v19 }
  0x5b   : > { %1190 = vmatmul.msk.bf16.gmra.mxu2 %vm385_vm0, %v1634_v19  ;;  %1182 = vmatmul.msk.bf16.gmra.mxu0 %vm385_vm0, %v1631_v18 }
  0x67   : > { %1199 = vmatmul.msk.bf16.gmra.mxu1 %vm385_vm0, %v1641_v20  ;;  %1207 = vmatmul.msk.bf16.gmra.mxu3 %vm385_vm0, %v1644_v21 }
  0x6b   : > { %1191 = vmatmul.msk.bf16.gmra.mxu2 %vm385_vm0, %v1644_v21  ;;  %1183 = vmatmul.msk.bf16.gmra.mxu0 %vm385_vm0, %v1641_v20 }
  0x77   : > { %1200 = vmatmul.msk.bf16.gmra.mxu1 %vm385_vm0, %v1651_v22  ;;  %1208 = vmatmul.msk.bf16.gmra.mxu3 %vm385_vm0, %v1654_v23 }
  0x7b   : > { %1192 = vmatmul.msk.bf16.gmra.mxu2 %vm385_vm0, %v1654_v23  ;;  %1184 = vmatmul.msk.bf16.gmra.mxu0 %vm385_vm0, %v1651_v22 }
  0x87   : > { %1201 = vmatmul.msk.bf16.gmra.mxu1 %vm385_vm0, %v1661_v24  ;;  %1209 = vmatmul.msk.bf16.gmra.mxu3 %vm385_vm0, %v1664_v25 }
  0x8b   : > { %1193 = vmatmul.msk.bf16.gmra.mxu2 %vm385_vm0, %v1664_v25  ;;  %1185 = vmatmul.msk.bf16.gmra.mxu0 %vm385_vm0, %v1661_v24 }
  0x97   : > { %1202 = vmatmul.msk.bf16.gmra.mxu1 %vm385_vm0, %v1671_v26  ;;  %1210 = vmatmul.msk.bf16.gmra.mxu3 %vm385_vm0, %v1674_v27 }
  0x9b   : > { %1194 = vmatmul.msk.bf16.gmra.mxu2 %vm385_vm0, %v1674_v27  ;;  %1186 = vmatmul.msk.bf16.gmra.mxu0 %vm385_vm0, %v1671_v26 }
  0xa4   : > { %v1680_v28 = vpop.f32.mrf.mxu1 }
  0xa5   : > { %708 = vrot.lane.b32.xlu0 %v1680_v28, %s1491_s5 }
  0xa8   : > { %v443_v22 = vpop.f32.mrf.mxu0 }
  0xaa   : > { %v1684_v29 = vpop.f32.mrf.mxu3 }
  0xab   : > { %740 = vrot.lane.b32.xlu1 %v1684_v29, %s1491_s5 }
  0xac   : > { %v1688_v30 = vpop.f32.mrf.mxu1 }
  0xad   : > { %710 = vrot.lane.b32.xlu0 %v1688_v30, %s1491_s5 }
  0xae   : > { %v483_v23 = vpop.f32.mrf.mxu2 }
  0xb0   : > { %v445_v26 = vpop.f32.mrf.mxu0 }
  0xb1   : > { %v1248_v27 = vpack.c.bf16 %v445_v26, %v443_v22 }
  0xb2   : > { %v1692_v31 = vpop.f32.mrf.mxu3 }
  0xb3   : > { %742 = vrot.lane.b32.xlu2 %v1692_v31, %s1491_s5 }
  0xb4   : > { %v1696_v32 = vpop.f32.mrf.mxu1 }
  0xb5   : > { %712 = vrot.lane.b32.xlu1 %v1696_v32, %s1491_s5 }
  0xba   : > { %v1712_v38 = vpop.f32.mrf.mxu3 }
  0xbb   : > { %744 = vrot.lane.b32.xlu0 %v1712_v38, %s1491_s5 }
  0xbc   : > { %v1716_v40 = vpop.f32.mrf.mxu1 }
  0xbd   : > { %714 = vrot.lane.b32.xlu1 %v1716_v40, %s1491_s5 }
  0xc2   : > { %v1732_v46 = vpop.f32.mrf.mxu3 }
  0xc4   : > { %v1734_v48 = vpop.f32.mrf.mxu1 }
  0xc5   : > { %746 = vrot.lane.b32.xlu1 %v1732_v46, %s1491_s5  ;;  %716 = vrot.lane.b32.xlu2 %v1734_v48, %s1491_s5 }
  0xca   : > { %v1744_v49 = vpop.f32.mrf.mxu3 }
  0xcc   : > { %v1746_v50 = vpop.f32.mrf.mxu1 }
  0xcd   : > { %748 = vrot.lane.b32.xlu2 %v1744_v49, %s1491_s5 }
  0xd2   : > { %v1750_v51 = vpop.f32.mrf.mxu3 }
  0xd3   : > { %750 = vrot.lane.b32.xlu0 %v1750_v51, %s1491_s5 }
  0xd4   : > { %v1754_v52 = vpop.f32.mrf.mxu1 }
  0xd5   : > { %718 = vrot.lane.b32.xlu2 %v1746_v50, %s1491_s5 }
  0xda   : > { %v1762_v53 = vpop.f32.mrf.mxu3 }
  0xdb   : > { %752 = vrot.lane.b32.xlu1 %v1762_v53, %s1491_s5  ;;  %720 = vrot.lane.b32.xlu0 %v1754_v52, %s1491_s5 }
  0xdc   : > { %v1768_v54 = vpop.f32.mrf.mxu1 }
  0xe2   : > { %v1770_v55 = vpop.f32.mrf.mxu3 }
  0xe3   : > { %754 = vrot.lane.b32.xlu2 %v1770_v55, %s1491_s5  ;;  %722 = vrot.lane.b32.xlu1 %v1768_v54, %s1491_s5 }
  0xe4   : > { %v1776_v56 = vpop.f32.mrf.mxu1 }
  0xea   : > { %v1782_v57 = vpop.f32.mrf.mxu3 }
  0xeb   : > { %756 = vrot.lane.b32.xlu0 %v1782_v57, %s1491_s5  ;;  %724 = vrot.lane.b32.xlu2 %v1776_v56, %s1491_s5 }
  0xec   : > { %v1788_v58 = vpop.f32.mrf.mxu1 }
  0xf2   : > { %v1790_v59 = vpop.f32.mrf.mxu3 }
  0xf3   : > { %758 = vrot.lane.b32.xlu1 %v1790_v59, %s1491_s5  ;;  %726 = vrot.lane.b32.xlu0 %v1788_v58, %s1491_s5 }
  0xf4   : > { %v1796_v60 = vpop.f32.mrf.mxu1 }
  0xfa   : > { %v1802_v61 = vpop.f32.mrf.mxu3 }
  0xfb   : > { %760 = vrot.lane.b32.xlu2 %v1802_v61, %s1491_s5  ;;  %728 = vrot.lane.b32.xlu1 %v1796_v60, %s1491_s5 }
  0xfc   : > { %v1808_v62 = vpop.f32.mrf.mxu1 }
 0x102   : > { %v1810_v63 = vpop.f32.mrf.mxu3 }
 0x103   : > { %762 = vrot.lane.b32.xlu0 %v1810_v63, %s1491_s5  ;;  %730 = vrot.lane.b32.xlu2 %v1808_v62, %s1491_s5 }
 0x104   : > { %v1816_v0 = vpop.f32.mrf.mxu1 }
 0x10a   : > { %v1823_v1 = vpop.f32.mrf.mxu3 }
 0x10b   : > { %764 = vrot.lane.b32.xlu1 %v1823_v1, %s1491_s5  ;;  %732 = vrot.lane.b32.xlu0 %v1816_v0, %s1491_s5 }
 0x10c   : > { %v1834_v3 = vpop.f32.mrf.mxu1 }
 0x10d   : > { %v743_v2 = vpop.permute.xlu2 %742 }
 0x10e   : > { %822 = vst.msk [vmem:[%s1832_s11 + $0x88] sm:$0xff] %vm804_vm1, %v743_v2 }
 0x112   : > { %v1838_v4 = vpop.f32.mrf.mxu3 }
 0x113   : > { %766 = vrot.lane.b32.xlu2 %v1838_v4, %s1491_s5  ;;  %734 = vrot.lane.b32.xlu1 %v1834_v3, %s1491_s5 }
 0x114   : > { %v1848_v6 = vpop.f32.mrf.mxu1 }
 0x117   : > { %v709_v5 = vpop.permute.xlu0 %708 }
 0x118   : > { %805 = vst.msk [vmem:[%s1832_s11] sm:$0xff] %vm804_vm1, %v709_v5 }
 0x11a   : > { %v1852_v7 = vpop.f32.mrf.mxu3 }
 0x11b   : > { %768 = vrot.lane.b32.xlu0 %v1852_v7, %s1491_s5  ;;  %736 = vrot.lane.b32.xlu2 %v1848_v6, %s1491_s5 }
 0x11c   : > { %v1864_v11 = vpop.f32.mrf.mxu1 }
 0x11d   : > { %v741_v8 = vpop.permute.xlu1 %740 }
 0x11e   : > { %821 = vst.msk [vmem:[%s1832_s11 + $0x80] sm:$0xff] %vm804_vm1, %v741_v8 }
 0x11f   : > { %v711_v9 = vpop.permute.xlu0 %710  ;;  %v717_v10 = vpop.permute.xlu2 %716 }
 0x120   : > { %806 = vst.msk [vmem:[%s1832_s11 + $0x8] sm:$0xff] %vm804_vm1, %v711_v9 }
 0x121   : > { %809 = vst.msk [vmem:[%s1832_s11 + $0x20] sm:$0xff] %vm804_vm1, %v717_v10 }
 0x122   : > { %v1866_v12 = vpop.f32.mrf.mxu3 }
 0x123   : > { %770 = vrot.lane.b32.xlu1 %v1866_v12, %s1491_s5  ;;  %738 = vrot.lane.b32.xlu0 %v1864_v11, %s1491_s5  ;;  %s1077_s5 = sshll.u32 %s1902_s9, 7 }
 0x124   : > { %s1911_s12 = scalar_lea.vmem [#allocation2], %s1077_s5 }
 0x125   : > { %1249 = vst [vmem:[%s1911_s12] sm:$0xff] %v1248_v27   ;;  %s931_s23 = sshll.u32 %s1911_s12, 4  ;;  %s932_s23 = int_to_ptr.vmem [resolvable:$true] %s931_s23 }
 0x127   : > { %v713_v13 = vpop.permute.xlu1 %712  ;;  %v749_v14 = vpop.permute.xlu2 %748 }
 0x128   : > { %807 = vst.msk [vmem:[%s1832_s11 + $0x10] sm:$0xff] %vm804_vm1, %v713_v13 }
 0x129   : > { %825 = vst.msk [vmem:[%s1832_s11 + $0xa0] sm:$0xff] %vm804_vm1, %v749_v14 }
 0x12d   : > { %v745_v15 = vpop.permute.xlu0 %744 }
 0x12e   : > { %823 = vst.msk [vmem:[%s1832_s11 + $0x90] sm:$0xff] %vm804_vm1, %v745_v15 }
 0x12f   : > { %v715_v16 = vpop.permute.xlu1 %714  ;;  %v719_v17 = vpop.permute.xlu2 %718 }
 0x130   : > { %808 = vst.msk [vmem:[%s1832_s11 + $0x18] sm:$0xff] %vm804_vm1, %v715_v16 }
 0x131   : > { %810 = vst.msk [vmem:[%s1832_s11 + $0x28] sm:$0xff] %vm804_vm1, %v719_v17 }
 0x137   : > { %v747_v18 = vpop.permute.xlu1 %746 }
 0x138   : > { %824 = vst.msk [vmem:[%s1832_s11 + $0x98] sm:$0xff] %vm804_vm1, %v747_v18 }
 0x13d   : > { %v755_v19 = vpop.permute.xlu2 %754 }
 0x13e   : > { %828 = vst.msk [vmem:[%s1832_s11 + $0xb8] sm:$0xff] %vm804_vm1, %v755_v19 }
 0x141   : > { %837 = vxpose.xlu2.b32.start [1/16] (narrow) %v1680_v28, 8  ;;  %v485_v28 = vpop.f32.mrf.mxu2 }
 0x145   : > { %v751_v20 = vpop.permute.xlu0 %750  ;;  %v725_v21 = vpop.permute.xlu2 %724  ;;  %869 = vxpose.xlu0.b32.start [1/16] (narrow) %v1684_v29, 8  ;;  %v1288_v29 = vpack.c.bf16 %v485_v28, %v483_v23 }
 0x146   : > { %826 = vst.msk [vmem:[%s1832_s11 + $0xa8] sm:$0xff] %vm804_vm1, %v751_v20 }
 0x147   : > { %813 = vst.msk [vmem:[%s1832_s11 + $0x40] sm:$0xff] %vm804_vm1, %v725_v21 }
 0x148   : > { %1332 = vst [vmem:[%s1911_s12 + $0x40] sm:$0xff] %v1288_v29  }
 0x149   : > { %838 = vxpose.xlu2.b32.cont [2/16] (narrow) %v1688_v30, 8  ;;  %v488_v33 = vpop.f32.mrf.mxu2 }
 0x14d   : > { %v753_v24 = vpop.permute.xlu1 %752  ;;  %v721_v25 = vpop.permute.xlu0 %720  ;;  %870 = vxpose.xlu0.b32.cont [2/16] (narrow) %v1692_v31, 8 }
 0x14e   : > { %827 = vst.msk [vmem:[%s1832_s11 + $0xb0] sm:$0xff] %vm804_vm1, %v753_v24 }
 0x14f   : > { %811 = vst.msk [vmem:[%s1832_s11 + $0x30] sm:$0xff] %vm804_vm1, %v721_v25 }
 0x151   : > { %839 = vxpose.xlu2.b32.cont [3/16] (narrow) %v1696_v32, 8  ;;  %v448_v32 = vpop.f32.mrf.mxu0 }
 0x155   : > { %v723_v30 = vpop.permute.xlu1 %722  ;;  %v761_v31 = vpop.permute.xlu2 %760  ;;  %871 = vxpose.xlu0.b32.cont [3/16] (narrow) %v1712_v38, 8 }
 0x156   : > { %812 = vst.msk [vmem:[%s1832_s11 + $0x38] sm:$0xff] %vm804_vm1, %v723_v30  ;;  %v490_v38 = vpop.f32.mrf.mxu2 }
 0x157   : > { %831 = vst.msk [vmem:[%s1832_s11 + $0xd0] sm:$0xff] %vm804_vm1, %v761_v31  ;;  %v1293_v39 = vpack.c.bf16 %v490_v38, %v488_v33 }
 0x159   : > { %840 = vxpose.xlu2.b32.cont [4/16] (narrow) %v1716_v40, 8  ;;  %v450_v36 = vpop.f32.mrf.mxu0  ;;  %1333 = vst [vmem:[%s1911_s12 + $0x48] sm:$0xff] %v1293_v39  }
 0x15a   : > { %v1253_v37 = vpack.c.bf16 %v450_v36, %v448_v32 }
 0x15c   : > { %1325 = vst [vmem:[%s1911_s12 + $0x8] sm:$0xff] %v1253_v37  }
 0x15d   : > { %v757_v34 = vpop.permute.xlu0 %756  ;;  %v731_v35 = vpop.permute.xlu2 %730  ;;  %872 = vxpose.xlu0.b32.cont [4/16] (narrow) %v1732_v46, 8 }
 0x15e   : > { %829 = vst.msk [vmem:[%s1832_s11 + $0xc0] sm:$0xff] %vm804_vm1, %v757_v34  ;;  %v493_v43 = vpop.f32.mrf.mxu2 }
 0x15f   : > { %816 = vst.msk [vmem:[%s1832_s11 + $0x58] sm:$0xff] %vm804_vm1, %v731_v35 }
 0x161   : > { %841 = vxpose.xlu2.b32.cont [5/16] (narrow) %v1734_v48, 8  ;;  %v453_v42 = vpop.f32.mrf.mxu0 }
 0x165   : > { %v759_v40 = vpop.permute.xlu1 %758  ;;  %v727_v41 = vpop.permute.xlu0 %726  ;;  %873 = vxpose.xlu0.b32.cont [5/16] (narrow) %v1744_v49, 8 }
 0x166   : > { %830 = vst.msk [vmem:[%s1832_s11 + $0xc8] sm:$0xff] %vm804_vm1, %v759_v40  ;;  %v495_v48 = vpop.f32.mrf.mxu2 }
 0x167   : > { %814 = vst.msk [vmem:[%s1832_s11 + $0x48] sm:$0xff] %vm804_vm1, %v727_v41  ;;  %v1298_v49 = vpack.c.bf16 %v495_v48, %v493_v43 }
 0x169   : > { %842 = vxpose.xlu2.b32.cont [6/16] (narrow) %v1746_v50, 8  ;;  %v455_v46 = vpop.f32.mrf.mxu0  ;;  %1334 = vst [vmem:[%s1911_s12 + $0x50] sm:$0xff] %v1298_v49  }
 0x16a   : > { %v1258_v47 = vpack.c.bf16 %v455_v46, %v453_v42 }
 0x16c   : > { %1326 = vst [vmem:[%s1911_s12 + $0x10] sm:$0xff] %v1258_v47  }
 0x16d   : > { %v729_v44 = vpop.permute.xlu1 %728  ;;  %v767_v45 = vpop.permute.xlu2 %766  ;;  %874 = vxpose.xlu0.b32.cont [6/16] (narrow) %v1750_v51, 8 }
 0x16e   : > { %815 = vst.msk [vmem:[%s1832_s11 + $0x50] sm:$0xff] %vm804_vm1, %v729_v44 }
 0x16f   : > { %834 = vst.msk [vmem:[%s1832_s11 + $0xe8] sm:$0xff] %vm804_vm1, %v767_v45 }
 0x171   : > { %843 = vxpose.xlu2.b32.cont [7/16] (narrow) %v1754_v52, 8  ;;  %v458_v51 = vpop.f32.mrf.mxu0  ;;  %v498_v52 = vpop.f32.mrf.mxu2 }
 0x175   : > { %v763_v50 = vpop.permute.xlu0 %762  ;;  %v737_v2 = vpop.permute.xlu2 %736  ;;  %875 = vxpose.xlu0.b32.cont [7/16] (narrow) %v1762_v53, 8 }
 0x176   : > { %832 = vst.msk [vmem:[%s1832_s11 + $0xd8] sm:$0xff] %vm804_vm1, %v763_v50 }
 0x177   : > { %819 = vst.msk [vmem:[%s1832_s11 + $0x70] sm:$0xff] %vm804_vm1, %v737_v2 }
 0x179   : > { %844 = vxpose.xlu2.b32.cont [8/16] (narrow) %v1768_v54, 8  ;;  %v460_v53 = vpop.f32.mrf.mxu0  ;;  %v500_v10 = vpop.f32.mrf.mxu2 }
 0x17a   : > { %v1263_v9 = vpack.c.bf16 %v460_v53, %v458_v51  ;;  %v1303_v13 = vpack.c.bf16 %v500_v10, %v498_v52 }
 0x17c   : > { %1327 = vst [vmem:[%s1911_s12 + $0x18] sm:$0xff] %v1263_v9  }
 0x17d   : > { %v765_v5 = vpop.permute.xlu1 %764  ;;  %v733_v8 = vpop.permute.xlu0 %732  ;;  %876 = vxpose.xlu0.b32.cont [8/16] (narrow) %v1770_v55, 8  ;;  %1335 = vst [vmem:[%s1911_s12 + $0x58] sm:$0xff] %v1303_v13  }
 0x17e   : > { %833 = vst.msk [vmem:[%s1832_s11 + $0xe0] sm:$0xff] %vm804_vm1, %v765_v5 }
 0x17f   : > { %817 = vst.msk [vmem:[%s1832_s11 + $0x60] sm:$0xff] %vm804_vm1, %v733_v8 }
 0x181   : > { %845 = vxpose.xlu2.b32.cont [9/16] (narrow) %v1776_v56, 8  ;;  %v463_v55 = vpop.f32.mrf.mxu0  ;;  %v503_v14 = vpop.f32.mrf.mxu2 }
 0x185   : > { %v735_v54 = vpop.permute.xlu1 %734  ;;  %877 = vxpose.xlu0.b32.cont [9/16] (narrow) %v1782_v57, 8 }
 0x186   : > { %818 = vst.msk [vmem:[%s1832_s11 + $0x68] sm:$0xff] %vm804_vm1, %v735_v54 }
 0x189   : > { %846 = vxpose.xlu2.b32.cont [10/16] (narrow) %v1788_v58, 8  ;;  %v465_v15 = vpop.f32.mrf.mxu0  ;;  %v505_v57 = vpop.f32.mrf.mxu2 }
 0x18a   : > { %v1268_v16 = vpack.c.bf16 %v465_v15, %v463_v55  ;;  %v1308_v17 = vpack.c.bf16 %v505_v57, %v503_v14 }
 0x18c   : > { %1328 = vst [vmem:[%s1911_s12 + $0x20] sm:$0xff] %v1268_v16  }
 0x18d   : > { %v769_v56 = vpop.permute.xlu0 %768  ;;  %878 = vxpose.xlu0.b32.cont [10/16] (narrow) %v1790_v59, 8  ;;  %1336 = vst [vmem:[%s1911_s12 + $0x60] sm:$0xff] %v1308_v17  }
 0x18e   : > { %835 = vst.msk [vmem:[%s1832_s11 + $0xf0] sm:$0xff] %vm804_vm1, %v769_v56 }
 0x191   : > { %847 = vxpose.xlu2.b32.cont [11/16] (narrow) %v1796_v60, 8  ;;  %v468_v59 = vpop.f32.mrf.mxu0  ;;  %v508_v60 = vpop.f32.mrf.mxu2 }
 0x195   : > { %v771_v18 = vpop.permute.xlu1 %770  ;;  %879 = vxpose.xlu0.b32.cont [11/16] (narrow) %v1802_v61, 8  ;;  %v739_v58 = vpop.permute.xlu0 %738 }
 0x196   : > { %836 = vst.msk [vmem:[%s1832_s11 + $0xf8] sm:$0xff] %vm804_vm1, %v771_v18 }
 0x197   : > { %820 = vst.msk [vmem:[%s1832_s11 + $0x78] sm:$0xff] %vm804_vm1, %v739_v58 }
 0x199   : > { %848 = vxpose.xlu2.b32.cont [12/16] (narrow) %v1808_v62, 8  ;;  %v470_v19 = vpop.f32.mrf.mxu0  ;;  %v510_v21 = vpop.f32.mrf.mxu2 }
 0x19a   : > { %v1273_v20 = vpack.c.bf16 %v470_v19, %v468_v59  ;;  %v1313_v61 = vpack.c.bf16 %v510_v21, %v508_v60 }
 0x19c   : > { %1329 = vst [vmem:[%s1911_s12 + $0x28] sm:$0xff] %v1273_v20  }
 0x19d   : > { %880 = vxpose.xlu0.b32.cont [12/16] (narrow) %v1810_v63, 8  ;;  %1337 = vst [vmem:[%s1911_s12 + $0x68] sm:$0xff] %v1313_v61  }
 0x1a1   : > { %849 = vxpose.xlu2.b32.cont [13/16] (narrow) %v1816_v0, 8  ;;  %v473_v62 = vpop.f32.mrf.mxu0  ;;  %v513_v22 = vpop.f32.mrf.mxu2 }
 0x1a5   : > { %881 = vxpose.xlu0.b32.cont [13/16] (narrow) %v1823_v1, 8 }
 0x1a9   : > { %850 = vxpose.xlu2.b32.cont [14/16] (narrow) %v1834_v3, 8  ;;  %v475_v63 = vpop.f32.mrf.mxu0  ;;  %v515_v23 = vpop.f32.mrf.mxu2 }
 0x1aa   : > { %v1278_v0 = vpack.c.bf16 %v475_v63, %v473_v62  ;;  %v1318_v24 = vpack.c.bf16 %v515_v23, %v513_v22 }
 0x1ac   : > { %1330 = vst [vmem:[%s1911_s12 + $0x30] sm:$0xff] %v1278_v0  }
 0x1ad   : > { %882 = vxpose.xlu0.b32.cont [14/16] (narrow) %v1838_v4, 8  ;;  %1338 = vst [vmem:[%s1911_s12 + $0x70] sm:$0xff] %v1318_v24  }
 0x1b1   : > { %851 = vxpose.xlu2.b32.cont [15/16] (narrow) %v1848_v6, 8  ;;  %v478_v1 = vpop.f32.mrf.mxu0  ;;  %v518_v3 = vpop.f32.mrf.mxu2 }
 0x1b5   : > { %883 = vxpose.xlu0.b32.cont [15/16] (narrow) %v1852_v7, 8 }
 0x1b9   : > { %852 = vxpose.xlu2.b32.end [16/16] (narrow) %v1864_v11, 8  ;;  %v480_v4 = vpop.f32.mrf.mxu0  ;;  %v520_v7 = vpop.f32.mrf.mxu2 }
 0x1ba   : > { %v1283_v6 = vpack.c.bf16 %v480_v4, %v478_v1  ;;  %v1323_v25 = vpack.c.bf16 %v520_v7, %v518_v3 }
 0x1bc   : > { %1331 = vst [vmem:[%s1911_s12 + $0x38] sm:$0xff] %v1283_v6  }
 0x1bd   : > { %884 = vxpose.xlu0.b32.end [16/16] (narrow) %v1866_v12, 8  ;;  %1339 = vst [vmem:[%s1911_s12 + $0x78] sm:$0xff] %v1323_v25  }
 0x1be   : > { %1422 = shalt.err (!%p1419_p3)
}
 0x1bf   : > { %s1492_s5 = smov 64   ;;  %s1493_s12 = smov 4   ;;  %vm904_vm2 = vcmask 1041408  }
 0x1c0   : > { %1348 = dma.vmem_to_hbm [thread:$0]  (%p1557_p5), %s932_s23, 2048, %s934_s27, %s909_s28, %s1492_s5, %s1492_s5, %s1493_s12  }
 0x1c1   : > { %s1078_s13 = sshll.u32 %s1902_s9, 2  ;;  %s1244_s14 = sshll.u32 %s1540_s19, 2 }
 0x1c2   : > { %s951_s6 = scalar_lea.hbm %s2041_s4, %s1244_s14  ;;  %s209_s7 = scalar_lea.vmem [#allocation4], %s1078_s13 }
 0x1c3   : > { %s953_s29 = sshll.u32 %s209_s7, 4  ;;  %s955_s30 = sshll.u32 %s951_s6, 4  ;;  %s954_s29 = int_to_ptr.vmem [resolvable:$true] %s953_s29  ;;  %s956_s30 = int_to_ptr.hbm [resolvable:$true] %s955_s30 }
 0x1c4   : > { %s919_s8 = scalar_lea.sflag [#allocation5], %s1902_s9  ;;  %s1437_s23 = sshra.s32 %s956_s30, 4  ;;  %s1438_s23 = int_to_ptr.hbm [resolvable:$true] %s1437_s23 }
 0x1c5   : > { %s1439_s19 = scalar_lea.hbm %s1438_s23, 4  ;;  %s1443_s10 = scalar_lea.hbm %s2041_s4, 8 }
 0x1c6   : > { %p1440_p4 = scmp.ne.s32.totalorder %s1438_s23, %s1439_s19  ;;  %p1444_p9 = scmp.lt.s32.totalorder %s1438_s23, %s2041_s4 }
 0x1c7   : > { %p1445_p10 = scmp.lt.s32.totalorder %s1443_s10, %s1439_s19 }
 0x1c8   : > { %p1441_p7 = pnand %p1440_p4, %p1557_p5 }
 0x1c9   : > { %p1446_p11 = por %p1445_p10, %p1444_p9 }
 0x1ca   : > { %p1442_p8 = pneg %p1441_p7 }
 0x1cc   : > { %p1447_p12 = pnand %p1446_p11, %p1442_p8 }
 0x1da   : > { %v853_v12 = vpop.trf.xlu2 }
 0x1e9   : > { %v885_v11 = vpop.trf.xlu0 }
 0x1ea   : > { %v903_v26 = vrot.slane %v885_v11, 6 }
 0x1ec   : > { %v905_v27 = vsel %vm904_vm2, %v853_v12, %v903_v26 }
 0x1ed   : > { %907 = vst [vmem:[%s209_s7] sm:$0xf] %v905_v27 }
 0x1ee   : > { %1450 = shalt.err (!%p1447_p12)
}
 0x1ef   : > { %1349 = dma.vmem_to_hbm [thread:$0]  (%p1557_p5), %s954_s29, 64, %s956_s30, %s919_s8  }
 0x1f0 PF: > { %p1359_p13 = scmp.ge.s32.totalorder %s1489_s18, 2  ;;  %s967_s9 = sand.u32 1, %s1477_s15  }
 0x1f1   : > { %s968_s12 = scalar_lea.sflag [#allocation3], %s967_s9 }
 0x1f2   : > { %p1353_p0 = pnand %p1359_p13, %p1561_p6 }
 0x1f4   : > { %p1354_p1 = pneg %p1353_p0 }
 0x1f6   : > { %1468 = dma.done.wait (%p1354_p1), %s968_s12, 2048  }
 0x1f7   : > { %1470 = vsyncadd (%p1354_p1), %s968_s12, 4294965248  ;;  %s986_s13 = scalar_lea.sflag [#allocation5], %s967_s9 }
 0x1f8   : > { %1472 = dma.done.wait (%p1354_p1), %s986_s13, 64  }
 0x1f9   : > { %1474 = vsyncadd (%p1354_p1), %s986_s13, 4294967232  ;;  %p18_p5 = scmp.ge.s32.totalorder %s1544_s21, 4   ;;  %s2044_s15 = smov %s1481_s16 }
 0x1fa   : > { %s2045_s16 = smov %s1485_s17  ;;  %s2046_s17 = smov %s1555_s24 }
 0x1fb   : > { %s2047_s18 = smov %s1544_s21  ;;  %20 = sbr.rel (!%p18_p5) target bundleno = 5 (0x5), region = 92 }
 0x200   :  { %992 = vsyncpa [#allocation3], 1 }
 0x201   :  { %994 = vsyncpa [#allocation3 + $0x1], 1 }
 0x202   :  { %995 = vsyncpa [#allocation5], 1 }
 0x203   :  { %997 = vsyncpa [#allocation5 + $0x1], 1 }

</bundles_post_ra>
